<compile_context>
chip_gen: v6e
topology: v6e:2x2x1
jax: 0.10.0
libtpu: 0.0.40
codegen_flags: <defaults>
</compile_context>

<pallas_src>
import functools

import jax
import jax.numpy as jnp
from jax.experimental import pallas as pl
from jax.experimental.pallas import tpu as pltpu


# --------------------------------------------------------------------------- slabs
def _round8(n):
    return ((n + 7) // 8) * 8


def _slab_layout(sd, ad, L):
    """Static row/col layout of the packed weight / bias slabs (sublane-aligned)."""
    in_dim = sd + ad
    wspecs = [("w0", 64 + 16, in_dim),   # [We0 ; Wd0_state(zero-padded action cols)]
              ("w1", 32, 64),            # We1
              ("wh1", 16, 32),           # [Wm0@We2 ; Ws0@We2]
              ("wh2", 2 * L, 16),        # block-diag(Wm1, Ws1)
              ("wd0z", 16, L),           # decoder L0, z columns
              ("wd1", ad, 16)]           # decoder L1
    bspecs = [("b0", 64 + 16), ("b1", 32), ("bh1", 16), ("bh2", 2 * L), ("bd1", ad)]

    w_off, off = {}, 0
    for name, r, c in wspecs:
        w_off[name] = (off, r, c)
        off += _round8(r)
    w_rows = off
    w_cols = max(c for _, _, c in wspecs)

    b_off, off = {}, 0
    for name, r in bspecs:
        b_off[name] = (off, r)
        off += _round8(r)
    b_rows = off
    return w_off, w_rows, w_cols, b_off, b_rows


def pack_params(p, state_dim, action_dim, latent_dim, compute_dtype=jnp.float32):
    """Fuse/stack the tiny Linear layers and pack them into two slabs.

    Call once (outside the generation hot path); the result is reused by every
    action_vae_forward call.
    """
    sd, ad, L = state_dim, action_dim, latent_dim
    w_off, w_rows, w_cols, b_off, b_rows = _slab_layout(sd, ad, L)

    # Decoder L0 consumes concat([state, z]) -> columns are [state | z].
    wd0s = p["wd0"][:, :sd]
    wd0z = p["wd0"][:, sd:]
    wd0x = jnp.concatenate([wd0s, jnp.zeros((16, ad), jnp.float32)], axis=1)

    # Stack encoder L0 with the decoder's state contribution (one MXU pass over x).
    w0 = jnp.concatenate([p["we0"], wd0x], axis=0)            # (80, sd+ad)
    b0 = jnp.concatenate([p["be0"], p["bd0"]], axis=0)        # (80, 1)

    # Fold encoder L2 into the first Linear of each head (exact rewrite), stacked.
    wh1 = jnp.concatenate([p["wm0"] @ p["we2"],
                           p["ws0"] @ p["we2"]], axis=0)       # (16, 32)
    bh1 = jnp.concatenate([p["wm0"] @ p["be2"] + p["bm0"],
                           p["ws0"] @ p["be2"] + p["bs0"]], axis=0)  # (16, 1)

    # Block-diagonal second head layer: rows 0:L -> mu, rows L:2L -> sigma pre-act.
    wh2 = jnp.zeros((2 * L, 16), jnp.float32)
    wh2 = wh2.at[:L, :8].set(p["wm1"]).at[L:, 8:].set(p["ws1"])
    bh2 = jnp.concatenate([p["bm1"], p["bs1"]], axis=0)        # (2L, 1)

    cdt = jnp.dtype(compute_dtype)
    w_slab = jnp.zeros((w_rows, w_cols), cdt)
    for name, arr in (("w0", w0), ("w1", p["we1"]), ("wh1", wh1), ("wh2", wh2),
                      ("wd0z", wd0z), ("wd1", p["wd1"])):
        off, r, c = w_off[name]
        w_slab = w_slab.at[off:off + r, :c].set(arr.astype(cdt))

    b_slab = jnp.zeros((b_rows, 1), jnp.float32)
    for name, arr in (("b0", b0), ("b1", p["be1"]), ("bh1", bh1), ("bh2", bh2),
                      ("bd1", p["bd1"])):
        off, r = b_off[name]
        b_slab = b_slab.at[off:off + r, :].set(arr.astype(jnp.float32))

    return w_slab, b_slab


# --------------------------------------------------------------------------- kernel
def _make_vae_kernel(sd, ad, L):
    w_off, _, _, b_off, _ = _slab_layout(sd, ad, L)

    def kernel(x_ref, noise_ref, w_ref, b_ref, out_ref):
        """One batch tile.  Activations are (features, tb); batch on the lane axis."""

        def w(name):
            off, r, c = w_off[name]
            return w_ref[off:off + r, 0:c]

        def b(name):
            off, r = b_off[name]
            return b_ref[off:off + r, 0:1]

        def mm(wv, act):
            # Matmul operands in the weight dtype (f32 or bf16); f32 MXU accumulation.
            return jnp.dot(wv, act.astype(wv.dtype),
                           preferred_element_type=jnp.float32)

        x = x_ref[...]                                   # (sd+ad, tb)

        # Encoder L0 + decoder state-contribution in a single MXU pass over x.
        t0 = mm(w("w0"), x) + b("b0")                    # (80, tb) f32
        h = jnp.maximum(t0[:64], 0.0)                    # encoder hidden (64, tb)
        dec_state = t0[64:80]                            # Wd0_s @ state + bd0 (16, tb)

        h = jnp.maximum(mm(w("w1"), h) + b("b1"), 0.0)   # (32, tb)

        # Fused encoder L2 + first head Linear (mu rows 0:8, sigma rows 8:16).
        hh = jnp.maximum(mm(w("wh1"), h) + b("bh1"), 0.0)   # (16, tb)
        head = mm(w("wh2"), hh) + b("bh2")                  # (2L, tb)
        mu = head[:L]
        sigma = jnp.exp(0.5 * head[L:])

        # Reparameterisation (noise == torch.randn_like(mu), supplied by the caller).
        z = sigma * noise_ref[...] + mu                     # (L, tb) f32

        # Decoder: ReLU(Wd0_s @ state + Wd0_z @ z + bd0) -> Linear -> Tanh.
        d = jnp.maximum(dec_state + mm(w("wd0z"), z), 0.0)  # (16, tb)
        dec = jnp.tanh(mm(w("wd1"), d) + b("bd1"))          # (ad, tb)

        out = jnp.concatenate([dec, mu, sigma], axis=0)     # (ad+2L, tb)
        out_ref[...] = out.astype(out_ref.dtype)

    return kernel


# --------------------------------------------------------------------------- wrapper
def _choose_tb(B, tb):
    b128 = pl.cdiv(B, 128) * 128
    if tb is None:
        # Largest 128-multiple tile <= 512 that divides the padded batch; prefer
        # >= 2 grid steps so both v7x TensorCores get work.  Per-step VMEM is < 2 MiB
        # even at tb=4096, so the choice is driven by step count / vreg pressure,
        # not VMEM capacity.
        cands = [c for c in (512, 384, 256, 128) if c <= b128 and b128 % c == 0]
        multi = [c for c in cands if b128 // c >= 2]
        tb = (multi or cands or [128])[0]
    tb = max(128, (int(tb) // 128) * 128)
    return min(tb, b128)


def action_vae_forward(state, action, noise, w_slab, b_slab, *,
                       latent_dim, tb=None, out_dtype=jnp.float32):
    """Pallas ActionVAE.forward -> (decoded, mu, sigma), each (batch, features).

    `w_slab`/`b_slab` come from pack_params() (precomputed once).  `noise` plays the
    role of torch.randn_like(mu), supplied explicitly for determinism.
    """
    B, sd = state.shape
    ad = action.shape[1]
    L = latent_dim
    in_dim = sd + ad
    n_out = ad + 2 * L

    tb = _choose_tb(B, tb)
    b_pad = pl.cdiv(B, tb) * tb
    grid = (b_pad // tb,)

    cdt = w_slab.dtype

    # Batch-on-lanes layout: (features, batch); pad batch up to a tile multiple.
    x = jnp.concatenate([state, action], axis=-1).astype(cdt).T      # (sd+ad, B)
    n = noise.astype(jnp.float32).T                                   # (L, B)
    if b_pad != B:
        x = jnp.pad(x, ((0, 0), (0, b_pad - B)))
        n = jnp.pad(n, ((0, 0), (0, b_pad - B)))

    kernel = _make_vae_kernel(sd, ad, L)

    batched = lambda rows: pl.BlockSpec((rows, tb), lambda i: (0, i))
    pinned = lambda arr: pl.BlockSpec(arr.shape, lambda i: (0, 0))    # VMEM-resident

    flops = 2 * b_pad * (80 * in_dim + 32 * 64 + 16 * 32 + 2 * L * 16
                         + 16 * L + ad * 16)
    bytes_accessed = int(x.size * x.dtype.itemsize + n.size * 4
                         + w_slab.size * w_slab.dtype.itemsize + b_slab.size * 4
                         + b_pad * n_out * jnp.dtype(out_dtype).itemsize)

    out = pl.pallas_call(
        kernel,
        grid=grid,
        in_specs=[batched(in_dim), batched(L), pinned(w_slab), pinned(b_slab)],
        out_specs=batched(n_out),
        out_shape=jax.ShapeDtypeStruct((n_out, b_pad), jnp.dtype(out_dtype)),
        compiler_params=pltpu.CompilerParams(
            dimension_semantics=("parallel",)),        # shards steps across v7x TCs
        cost_estimate=pl.CostEstimate(flops=int(flops),
                                      transcendentals=int(b_pad * (L + ad)),
                                      bytes_accessed=bytes_accessed),
    )(x, n, w_slab, b_slab)

    # Layout plumbing back to the module's (batch, features) convention (fuses under jit).
    dec = out[:ad, :B].T
    mu = out[ad:ad + L, :B].T
    sigma = out[ad + L:, :B].T
    return dec, mu, sigma


# --------------------------------------------------------------------------- init / reference
def init_params(key, state_dim, action_dim, latent_dim):
    """PyTorch nn.Linear-style init; weights stored (out, in), biases (out, 1)."""
    def linear(k, fan_in, fan_out):
        kw, kb = jax.random.split(k)
        bound = 1.0 / jnp.sqrt(fan_in)
        wgt = jax.random.uniform(kw, (fan_out, fan_in), jnp.float32, -bound, bound)
        bias = jax.random.uniform(kb, (fan_out, 1), jnp.float32, -bound, bound)
        return wgt, bias

    ks = jax.random.split(key, 7)
    we0, be0 = linear(ks[0], state_dim + action_dim, 64)
    we1, be1 = linear(ks[1], 64, 32)
    we2, be2 = linear(ks[2], 32, 16)
    wm0, bm0 = linear(ks[3], 16, 8)
    wm1, bm1 = linear(ks[4], 8, latent_dim)
    # sigmaencoder = deepcopy(muencoder) at init => identical weights; they diverge
    # with training, so they are stored and consumed separately by the kernel.
    ws0, bs0, ws1, bs1 = wm0, bm0, wm1, bm1
    wd0, bd0 = linear(ks[5], latent_dim + state_dim, 16)   # columns: [state | z]
    wd1, bd1 = linear(ks[6], 16, action_dim)
    return {"we0": we0, "be0": be0, "we1": we1, "be1": be1, "we2": we2, "be2": be2,
            "wm0": wm0, "bm0": bm0, "wm1": wm1, "bm1": bm1,
            "ws0": ws0, "bs0": bs0, "ws1": ws1, "bs1": bs1,
            "wd0": wd0, "bd0": bd0, "wd1": wd1, "bd1": bd1}


def _reference_forward(state, action, noise, p):
    """Plain-JAX batch-major reference matching the PyTorch forward."""
    x = jnp.concatenate([state, action], -1)
    h = jnp.maximum(x @ p["we0"].T + p["be0"].T, 0.0)
    h = jnp.maximum(h @ p["we1"].T + p["be1"].T, 0.0)
    feat = h @ p["we2"].T + p["be2"].T
    hm = jnp.maximum(feat @ p["wm0"].T + p["bm0"].T, 0.0)
    mu = hm @ p["wm1"].T + p["bm1"].T
    hs = jnp.maximum(feat @ p["ws0"].T + p["bs0"].T, 0.0)
    sigma = jnp.exp(0.5 * (hs @ p["ws1"].T + p["bs1"].T))
    z = sigma * noise + mu
    d = jnp.maximum(jnp.concatenate([state, z], -1) @ p["wd0"].T + p["bd0"].T, 0.0)
    dec = jnp.tanh(d @ p["wd1"].T + p["bd1"].T)
    return dec, mu, sigma


# --------------------------------------------------------------------------- demo
if __name__ == "__main__":
    B, state_dim, action_dim, latent_dim = 256, 12, 4, 3

    root = jax.random.PRNGKey(0)
    k_state, k_action, k_noise, k_params, k_pert = jax.random.split(root, 5)

    state = jax.random.normal(k_state, (B, state_dim), jnp.float32)
    action = jax.random.normal(k_action, (B, action_dim), jnp.float32)
    # noise corresponds to torch.randn_like(mu); generated host-side for determinism.
    noise = jax.random.normal(k_noise, (B, latent_dim), jnp.float32)

    params = init_params(k_params, state_dim, action_dim, latent_dim)
    w_slab, b_slab = pack_params(params, state_dim, action_dim, latent_dim)

    # f32 path, jitted wrapper (input transpose/pad + output split fuse around the
    # kernel).  Auto tb -> 128 here, i.e. 2 pipelined / megacore-shardable steps.
    fwd = jax.jit(functools.partial(action_vae_forward, latent_dim=latent_dim))
    decoded, mu, sigma = jax.block_until_ready(fwd(state, action, noise, w_slab, b_slab))

    ref_dec, ref_mu, ref_sigma = _reference_forward(state, action, noise, params)
    assert decoded.shape == (B, action_dim)
    assert mu.shape == (B, latent_dim) and sigma.shape == (B, latent_dim)
    assert jnp.allclose(decoded, ref_dec, atol=2e-4), "decoded mismatch"
    assert jnp.allclose(mu, ref_mu, atol=2e-4), "mu mismatch"
    assert jnp.allclose(sigma, ref_sigma, atol=2e-4), "sigma mismatch"

    # Diverged mu/sigma heads (post-training state): kernel must NOT reuse mu weights.
    pk = jax.random.split(k_pert, 4)
    p2 = dict(params)
    p2["ws0"] = params["ws0"] + 0.1 * jax.random.normal(pk[0], params["ws0"].shape)
    p2["bs0"] = params["bs0"] + 0.1 * jax.random.normal(pk[1], params["bs0"].shape)
    p2["ws1"] = params["ws1"] + 0.1 * jax.random.normal(pk[2], params["ws1"].shape)
    p2["bs1"] = params["bs1"] + 0.1 * jax.random.normal(pk[3], params["bs1"].shape)
    w2, b2 = pack_params(p2, state_dim, action_dim, latent_dim)
    d2, m2, s2 = jax.block_until_ready(
        action_vae_forward(state, action, noise, w2, b2, latent_dim=latent_dim))
    r2d, r2m, r2s = _reference_forward(state, action, noise, p2)
    assert jnp.allclose(d2, r2d, atol=2e-4), "decoded mismatch (diverged heads)"
    assert jnp.allclose(m2, r2m, atol=2e-4), "mu mismatch (diverged heads)"
    assert jnp.allclose(s2, r2s, atol=2e-4), "sigma mismatch (diverged heads)"

    # bf16 matmul operands (f32 accumulate, f32 elementwise) — halves streamed bytes.
    # Note: sigma error is amplified by exp(); keep f32 if the consumer is sensitive.
    w16, b16 = pack_params(params, state_dim, action_dim, latent_dim,
                           compute_dtype=jnp.bfloat16)
    d16, m16, s16 = jax.block_until_ready(
        action_vae_forward(state, action, noise, w16, b16, latent_dim=latent_dim))
    assert jnp.allclose(d16, ref_dec, atol=5e-2, rtol=5e-2), "bf16 decoded mismatch"
    assert jnp.allclose(m16, ref_mu, atol=5e-2, rtol=5e-2), "bf16 mu mismatch"
    assert jnp.allclose(s16, ref_sigma, atol=5e-2, rtol=5e-2), "bf16 sigma mismatch"

    print("KERNEL_OK")
</pallas_src>

<mosaic_0001>
module attributes {stable_mosaic.version = 11 : i64} {
  func.func @kernel(%arg0: i32, %arg1: memref<16x128xf32, #tpu.memory_space<vmem>>, %arg2: memref<3x128xf32, #tpu.memory_space<vmem>>, %arg3: memref<160x64xf32, #tpu.memory_space<vmem>>, %arg4: memref<144x1xf32, #tpu.memory_space<vmem>>, %arg5: memref<10x128xf32, #tpu.memory_space<vmem>>) attributes {dimension_semantics = [#tpu.dimension_semantics<parallel>], iteration_bounds = array<i64: 2>, scalar_prefetch = 0 : i64, scratch_operands = 0 : i64, tpu.core_type = #tpu.core_type<tc>, window_params = [{transform_indices = @transform_0, window_bounds = array<i64: 16, 128>}, {transform_indices = @transform_1, window_bounds = array<i64: 3, 128>}, {pipeline_mode = #tpu.pipeline_mode<synchronous>, transform_indices = @transform_2, window_bounds = array<i64: 160, 64>}, {pipeline_mode = #tpu.pipeline_mode<synchronous>, transform_indices = @transform_3, window_bounds = array<i64: 144, 1>}, {transform_indices = @transform_4, window_bounds = array<i64: 10, 128>}]} {
    %c0 = arith.constant 0 : index
    %c0_0 = arith.constant 0 : index
    %0 = vector.load %arg1[%c0, %c0_0] : memref<16x128xf32, #tpu.memory_space<vmem>>, vector<16x128xf32>
    %c0_1 = arith.constant 0 : index
    %c0_2 = arith.constant 0 : index
    %1 = vector.load %arg3[%c0_1, %c0_2] : memref<160x64xf32, #tpu.memory_space<vmem>>, vector<80x16xf32>
    %cst = arith.constant dense<0.000000e+00> : vector<80x128xf32>
    %2 = tpu.matmul %1, %0, %cst {dimension_numbers = #tpu.dot_dimension_numbers<[1], [0], [0], [1], [0, 0, 1, 1], [], []>} : vector<80x16xf32>, vector<16x128xf32>, vector<80x128xf32> -> vector<80x128xf32>
    %c0_3 = arith.constant 0 : index
    %c0_4 = arith.constant 0 : index
    %3 = vector.load %arg4[%c0_3, %c0_4] : memref<144x1xf32, #tpu.memory_space<vmem>>, vector<80x1xf32>
    %4 = vector.broadcast %3 : vector<80x1xf32> to vector<80x128xf32>
    %5 = arith.addf %2, %4 : vector<80x128xf32>
    %6 = vector.extract_strided_slice %5 {offsets = [0, 0], sizes = [64, 128], strides = [1, 1]} : vector<80x128xf32> to vector<64x128xf32>
    %cst_5 = arith.constant 0.000000e+00 : f32
    %7 = vector.broadcast %cst_5 : f32 to vector<64x128xf32>
    %8 = arith.maximumf %6, %7 : vector<64x128xf32>
    %9 = vector.extract_strided_slice %5 {offsets = [64, 0], sizes = [16, 128], strides = [1, 1]} : vector<80x128xf32> to vector<16x128xf32>
    %c80 = arith.constant 80 : index
    %c0_6 = arith.constant 0 : index
    %10 = vector.load %arg3[%c80, %c0_6] : memref<160x64xf32, #tpu.memory_space<vmem>>, vector<32x64xf32>
    %cst_7 = arith.constant dense<0.000000e+00> : vector<32x128xf32>
    %11 = tpu.matmul %10, %8, %cst_7 {dimension_numbers = #tpu.dot_dimension_numbers<[1], [0], [0], [1], [0, 0, 1, 1], [], []>} : vector<32x64xf32>, vector<64x128xf32>, vector<32x128xf32> -> vector<32x128xf32>
    %c80_8 = arith.constant 80 : index
    %c0_9 = arith.constant 0 : index
    %12 = vector.load %arg4[%c80_8, %c0_9] : memref<144x1xf32, #tpu.memory_space<vmem>>, vector<32x1xf32>
    %13 = vector.broadcast %12 : vector<32x1xf32> to vector<32x128xf32>
    %14 = arith.addf %11, %13 : vector<32x128xf32>
    %cst_10 = arith.constant 0.000000e+00 : f32
    %15 = vector.broadcast %cst_10 : f32 to vector<32x128xf32>
    %16 = arith.maximumf %14, %15 : vector<32x128xf32>
    %c112 = arith.constant 112 : index
    %c0_11 = arith.constant 0 : index
    %17 = vector.load %arg3[%c112, %c0_11] : memref<160x64xf32, #tpu.memory_space<vmem>>, vector<16x32xf32>
    %cst_12 = arith.constant dense<0.000000e+00> : vector<16x128xf32>
    %18 = tpu.matmul %17, %16, %cst_12 {dimension_numbers = #tpu.dot_dimension_numbers<[1], [0], [0], [1], [0, 0, 1, 1], [], []>} : vector<16x32xf32>, vector<32x128xf32>, vector<16x128xf32> -> vector<16x128xf32>
    %c112_13 = arith.constant 112 : index
    %c0_14 = arith.constant 0 : index
    %19 = vector.load %arg4[%c112_13, %c0_14] : memref<144x1xf32, #tpu.memory_space<vmem>>, vector<16x1xf32>
    %20 = vector.broadcast %19 : vector<16x1xf32> to vector<16x128xf32>
    %21 = arith.addf %18, %20 : vector<16x128xf32>
    %cst_15 = arith.constant 0.000000e+00 : f32
    %22 = vector.broadcast %cst_15 : f32 to vector<16x128xf32>
    %23 = arith.maximumf %21, %22 : vector<16x128xf32>
    %c128 = arith.constant 128 : index
    %c0_16 = arith.constant 0 : index
    %24 = vector.load %arg3[%c128, %c0_16] : memref<160x64xf32, #tpu.memory_space<vmem>>, vector<6x16xf32>
    %cst_17 = arith.constant dense<0.000000e+00> : vector<6x128xf32>
    %25 = tpu.matmul %24, %23, %cst_17 {dimension_numbers = #tpu.dot_dimension_numbers<[1], [0], [0], [1], [0, 0, 1, 1], [], []>} : vector<6x16xf32>, vector<16x128xf32>, vector<6x128xf32> -> vector<6x128xf32>
    %c128_18 = arith.constant 128 : index
    %c0_19 = arith.constant 0 : index
    %26 = vector.load %arg4[%c128_18, %c0_19] : memref<144x1xf32, #tpu.memory_space<vmem>>, vector<6x1xf32>
    %27 = vector.broadcast %26 : vector<6x1xf32> to vector<6x128xf32>
    %28 = arith.addf %25, %27 : vector<6x128xf32>
    %29 = vector.extract_strided_slice %28 {offsets = [0, 0], sizes = [3, 128], strides = [1, 1]} : vector<6x128xf32> to vector<3x128xf32>
    %30 = vector.extract_strided_slice %28 {offsets = [3, 0], sizes = [3, 128], strides = [1, 1]} : vector<6x128xf32> to vector<3x128xf32>
    %cst_20 = arith.constant 5.000000e-01 : f32
    %31 = vector.broadcast %cst_20 : f32 to vector<3x128xf32>
    %32 = arith.mulf %31, %30 : vector<3x128xf32>
    %33 = math.exp %32 : vector<3x128xf32>
    %c0_21 = arith.constant 0 : index
    %c0_22 = arith.constant 0 : index
    %34 = vector.load %arg2[%c0_21, %c0_22] : memref<3x128xf32, #tpu.memory_space<vmem>>, vector<3x128xf32>
    %35 = arith.mulf %33, %34 : vector<3x128xf32>
    %36 = arith.addf %35, %29 : vector<3x128xf32>
    %c136 = arith.constant 136 : index
    %c0_23 = arith.constant 0 : index
    %37 = vector.load %arg3[%c136, %c0_23] : memref<160x64xf32, #tpu.memory_space<vmem>>, vector<16x3xf32>
    %cst_24 = arith.constant dense<0.000000e+00> : vector<16x128xf32>
    %38 = tpu.matmul %37, %36, %cst_24 {dimension_numbers = #tpu.dot_dimension_numbers<[1], [0], [0], [1], [0, 0, 1, 1], [], []>} : vector<16x3xf32>, vector<3x128xf32>, vector<16x128xf32> -> vector<16x128xf32>
    %39 = arith.addf %9, %38 : vector<16x128xf32>
    %cst_25 = arith.constant 0.000000e+00 : f32
    %40 = vector.broadcast %cst_25 : f32 to vector<16x128xf32>
    %41 = arith.maximumf %39, %40 : vector<16x128xf32>
    %c152 = arith.constant 152 : index
    %c0_26 = arith.constant 0 : index
    %42 = vector.load %arg3[%c152, %c0_26] : memref<160x64xf32, #tpu.memory_space<vmem>>, vector<4x16xf32>
    %cst_27 = arith.constant dense<0.000000e+00> : vector<4x128xf32>
    %43 = tpu.matmul %42, %41, %cst_27 {dimension_numbers = #tpu.dot_dimension_numbers<[1], [0], [0], [1], [0, 0, 1, 1], [], []>} : vector<4x16xf32>, vector<16x128xf32>, vector<4x128xf32> -> vector<4x128xf32>
    %c136_28 = arith.constant 136 : index
    %c0_29 = arith.constant 0 : index
    %44 = vector.load %arg4[%c136_28, %c0_29] : memref<144x1xf32, #tpu.memory_space<vmem>>, vector<4x1xf32>
    %45 = vector.broadcast %44 : vector<4x1xf32> to vector<4x128xf32>
    %46 = arith.addf %43, %45 : vector<4x128xf32>
    %47 = math.tanh %46 : vector<4x128xf32>
    %48 = tpu.concatenate %47, %29, %33 in 0 : vector<4x128xf32>, vector<3x128xf32>, vector<3x128xf32> -> vector<10x128xf32>
    %c0_30 = arith.constant 0 : index
    %c0_31 = arith.constant 0 : index
    %49 = vector.load %arg5[%c0_30, %c0_31] : memref<10x128xf32, #tpu.memory_space<vmem>>, vector<10x128xf32>
    tpu.vector_store %arg5[%c0_30, %c0_31], %48 {strides = array<i32>} : memref<10x128xf32, #tpu.memory_space<vmem>>, vector<10x128xf32>,
    return
  }
  func.func @transform_0(%arg0: i32) -> (i32, i32) {
    %c0_i32 = arith.constant 0 : i32
    %c0_i32_0 = arith.constant 0 : i32
    return %c0_i32, %arg0 : i32, i32
  }
  func.func @transform_1(%arg0: i32) -> (i32, i32) {
    %c0_i32 = arith.constant 0 : i32
    %c0_i32_0 = arith.constant 0 : i32
    return %c0_i32, %arg0 : i32, i32
  }
  func.func @transform_2(%arg0: i32) -> (i32, i32) {
    %c0_i32 = arith.constant 0 : i32
    %c0_i32_0 = arith.constant 0 : i32
    %c0_i32_1 = arith.constant 0 : i32
    return %c0_i32, %c0_i32_0 : i32, i32
  }
  func.func @transform_3(%arg0: i32) -> (i32, i32) {
    %c0_i32 = arith.constant 0 : i32
    %c0_i32_0 = arith.constant 0 : i32
    %c0_i32_1 = arith.constant 0 : i32
    return %c0_i32, %c0_i32_0 : i32, i32
  }
  func.func @transform_4(%arg0: i32) -> (i32, i32) {
    %c0_i32 = arith.constant 0 : i32
    %c0_i32_0 = arith.constant 0 : i32
    return %c0_i32, %arg0 : i32, i32
  }
}

</mosaic_0001>

<bundles_post_ra>
// kernel: action_vae_forward.1
= control target key start
LH: loop header
LB: loop body
LE: loop exit
PB: predicated region body
PF: predicated region fallthrough
CT: control target
= control target key end

     0   :  { %s1323_s15 = smov 0   ;;  %s1325_s16 = smov 0   ;;  %s1524_s0 = inlined_call_operand.vmem [shape: f32[16,256], index: 0, kind: input, shape index: {}]   ;;  %s1525_s1 = inlined_call_operand.vmem [shape: f32[3,256], index: 1, kind: input, shape index: {}]   ;;  %s1526_s2 = inlined_call_operand.vmem [shape: f32[160,64], index: 2, kind: input, shape index: {}]   ;;  %s1527_s3 = inlined_call_operand.vmem [shape: f32[144,1], index: 3, kind: input, shape index: {}]   ;;  %s1528_s4 = inlined_call_operand.vmem [shape: f32[10,256], index: 4, kind: output, shape index: {}]  }
   0x1   :  { %s1327_s17 = smov 0  }
   0x2 LB: > { %s1336_s18 = sadd.s32 4294967295, %s1293_s17   ;;  %s1338_s19 = sadd.s32 1, %s1293_s17   ;;  %s1293_s17 = sphi %s1327_s17, %s1532_s17   ;;  %s1289_s16 = sphi %s1325_s16, %s1531_s16   ;;  %s1285_s15 = sphi %s1323_s15, %s1530_s15  }
   0x3   : > { %s18_s20 = ssub.s32 %s1293_s17, %s1338_s19  ;;  %s21_s21 = sadd.s32 1, %s1289_s16 }
   0x4   : > { %p19_p0 = scmp.eq.s32.totalorder %s18_s20, 0  ;;  %p28_p1 = scmp.ne.s32.totalorder %s1289_s16, %s1285_s15 }
   0x5   : > { %p29_p2 = scmp.eq.s32.totalorder %s1293_s17, 0  ;;  %p126_p3 = scmp.eq.s32.totalorder %s1336_s18, 1 }
   0x6   : > { %s1346_s22 = scalar_select %p19_p0, %s1289_s16, %s21_s21  }
   0x7   : > { %p30_p4 = por %p29_p2, %p28_p1  ;;  %p1348_p5 = por %p126_p3, %p28_p1 }
   0x8   : > { %p1096_p6 = scmp.ge.s32.totalorder %s1293_s17, 2 }
   0xa   : > { %154 = sbr.rel (%p1096_p6) target bundleno = 20 (0x14), region = 24 }
   0xf   : > { %157 = sbr.rel (!%p30_p4) target bundleno = 20 (0x14), region = 28  ;;  %s159_s24 = sand.u32 (%p30_p4), 1, %s1289_s16  }
  0x10   : > { %s1098_s25 = sshll.u32 (%p30_p4), %s1293_s17, 3  ;;  %s1097_s26 = sshll.u32 (%p30_p4), %s159_s24, 4 }
  0x11   : > { %s163_s29 = scalar_lea.vmem (%p30_p4), %s1524_s0, %s1098_s25  ;;  %s161_s30 = scalar_lea.vmem (%p30_p4), [#allocation2], %s1097_s26 }
  0x12   : > { %v194_v0 = vld [vmem:[%s163_s29] sm:$0xff] (%p30_p4)  ;;  %v196_v1 = vld [vmem:[%s163_s29 + $0x10] sm:$0xff] (%p30_p4) }
  0x13   : > { %195 = vst [vmem:[%s161_s30] sm:$0xff] (%p30_p4), %v194_v0  ;;  %197 = vst [vmem:[%s161_s30 + $0x8] sm:$0xff] (%p30_p4), %v196_v1 }
  0x14 PF: > { %p1099_p7 = scmp.ge.s32.totalorder %s1293_s17, 1  ;;  %p209_p8 = scmp.lt.s32.totalorder %s1293_s17, 3 }
  0x16   : > { %p210_p9 = pnand %p1099_p7, %p209_p8 }
  0x17   : > { %s216_s5 = sand.u32 (!%p210_p9), 1, %s1285_s15   ;;  %p244_p10 = scmp.lt.s32.totalorder (!%p210_p9), %s1336_s18, 1 }
  0x18   : > { %213 = sbr.rel (%p210_p9) target bundleno = 1310 (0x51e), region = 70  ;;  %s1360_s8 = sshll.u32 (!%p210_p9), %s216_s5, 4 }
  0x19   : > { %s218_s9 = scalar_lea.vmem (!%p210_p9), [#allocation2], %s1360_s8  ;;  %s1494_s30 = scalar_lea.vmem (!%p210_p9), [#allocation3], %s1360_s8 }
  0x1d   : > { %v250_v2 = vld [vmem:[%s1526_s2] sm:$0xff]  ;;  %vm320_vm0 = vcmask 130048   ;;  %v1295_v3 = vmov 0   ;;  %v249_v4 = vld [vmem:[%s218_s9 + $0x8] sm:$0xff]  ;;  %v252_v9 = vld [vmem:[%s1526_s2 + $0x10] sm:$0xff]  ;;  %vm502_vm1 = vcmask 523264  }
  0x1e   : > { %1171 = vmatprep.mubr.msk.f32.mxu0 %vm320_vm0, %v250_v2  ;;  %1265 = vset.pattern.permute.xlu0 %v1295_v3  ;;  %v248_v5 = vld [vmem:[%s218_s9] sm:$0xff]  ;;  %v267_v6 = vld [vmem:[%s1527_s3 + $0x38] sm:$0xff]  ;;  %v265_v7 = vld [vmem:[%s1527_s3 + $0x28] sm:$0xff]  ;;  %vm618_vm2 = vcmask 261120   ;;  %vm1297_vm3 = vmmov 0   ;;  %vm798_vm4 = vcmask 23552  }
  0x1f   : > { %1266 = vset.pattern.permute.xlu1 %v1295_v3  ;;  %1167 = vmatprep.subr.mxu0 %v249_v4  ;;  %v251_v8 = vld [vmem:[%s1526_s2 + $0x8] sm:$0xff]  ;;  %v266_v10 = vld [vmem:[%s1527_s3 + $0x30] sm:$0xff]  ;;  %v264_v11 = vld [vmem:[%s1527_s3 + $0x20] sm:$0xff]  ;;  %s245_s25 = scalar_select %p244_p10, %s1336_s18, 1  ;;  %vm805_vm5 = vcmask 1042432   ;;  %vm973_vm6 = vcmask 1043456  }
  0x20   : > { %1168 = vmatpush3.msra.mxu0 %v249_v4  ;;  %307 = vperm.xlu0 %1265, %v267_v6   ;;  %v253_v12 = vld [vmem:[%s1526_s2 + $0x18] sm:$0xff]  ;;  %v254_v13 = vld [vmem:[%s1526_s2 + $0x20] sm:$0xff]  ;;  %v262_v15 = vld [vmem:[%s1527_s3 + $0x10] sm:$0xff]  ;;  %vm975_vm7 = vcmask 1046528   ;;  %s1125_s9 = sshll.u32 (%p1348_p5), %s1336_s18, 3 }
  0x21   : > { %1169 = vmatprep.subr.mxu0 %v248_v5  ;;  %297 = vperm.xlu1 %1266, %v265_v7   ;;  %v263_v14 = vld [vmem:[%s1527_s3 + $0x18] sm:$0xff]  ;;  %v255_v16 = vld [vmem:[%s1526_s2 + $0x28] sm:$0xff]  ;;  %v256_v17 = vld [vmem:[%s1526_s2 + $0x30] sm:$0xff]  ;;  %s1102_s26 = sshll.u32 %s245_s25, 2  ;;  %s987_s12 = scalar_lea.vmem (%p1348_p5), %s1528_s4, %s1125_s9 }
  0x22   : > { %1170 = vmatpush3.msra.mxu0 %v248_v5  ;;  %v261_v18 = vld [vmem:[%s1527_s3 + $0x8] sm:$0xff]  ;;  %v260_v19 = vld [vmem:[%s1527_s3] sm:$0xff]  ;;  %v257_v20 = vld [vmem:[%s1526_s2 + $0x38] sm:$0xff]  ;;  %s247_s29 = scalar_lea.vmem %s1525_s1, %s1102_s26 }
  0x23   : > { %1172 = vmatmul.mubr.msk.f32.vlgmr.msra.gmra.mxu0 %vm320_vm0, %v251_v8  ;;  %v258_v21 = vld [vmem:[%s1526_s2 + $0x40] sm:$0xff]  ;;  %v481_v22 = vld [vmem:[%s1527_s3 + $0x68] sm:$0xff]  ;;  %v479_v25 = vld [vmem:[%s1527_s3 + $0x58] sm:$0xff] }
  0x24   : > { %1174 = vmatprep.mubr.msk.f32.mxu0 %vm320_vm0, %v252_v9  ;;  %302 = vperm.xlu0 %1265, %v266_v10   ;;  %v480_v23 = vld [vmem:[%s1527_s3 + $0x60] sm:$0xff]  ;;  %v259_v24 = vld [vmem:[%s1526_s2 + $0x48] sm:$0xff]  ;;  %v478_v26 = vld [vmem:[%s1527_s3 + $0x50] sm:$0xff] }
  0x25   : > { %292 = vperm.xlu1 %1266, %v264_v11   ;;  %v607_v27 = vld [vmem:[%s1527_s3 + $0x78] sm:$0xff]  ;;  %v606_v28 = vld [vmem:[%s1527_s3 + $0x70] sm:$0xff]  ;;  %v703_v29 = vld [vmem:[%s1527_s3 + $0x80] sm:$0x3f] }
  0x26   : > { %v269_v30 = vld [vmem:[%s1527_s3 + $0x48] sm:$0xff]  ;;  %v268_v31 = vld [vmem:[%s1527_s3 + $0x40] sm:$0xff]  ;;  %v474_v33 = vld [vmem:[%s1526_s2 + $0x50] sm:$0xff] }
  0x27   : > { %1175 = vmatmul.mubr.msk.f32.gmra.mxu0 %vm320_vm0, %v253_v12  ;;  %v888_v32 = vld [vmem:[%s1527_s3 + $0x88] sm:$0xf]  ;;  %1202 = vmatprep.mubr.msk.f32.mxu1 %vm502_vm1, %v474_v33  ;;  %v475_v2 = vld [vmem:[%s1526_s2 + $0x58] sm:$0xff]  ;;  %v476_v3 = vld [vmem:[%s1526_s2 + $0x60] sm:$0xff] }
  0x28   : > { %1177 = vmatprep.mubr.msk.f32.mxu0 %vm320_vm0, %v254_v13  ;;  %287 = vperm.xlu0 %1265, %v263_v14   ;;  %v477_v4 = vld [vmem:[%s1526_s2 + $0x68] sm:$0xff]  ;;  %v604_v5 = vld [vmem:[%s1526_s2 + $0x70] sm:$0xff] }
  0x29   : > { %282 = vperm.xlu1 %1266, %v262_v15  }
  0x2b   : > { %1178 = vmatmul.mubr.msk.f32.gmra.mxu0 %vm320_vm0, %v255_v16 }
  0x2c   : > { %1180 = vmatprep.mubr.msk.f32.mxu0 %vm320_vm0, %v256_v17  ;;  %277 = vperm.xlu0 %1265, %v261_v18  }
  0x2d   : > { %272 = vperm.xlu1 %1266, %v260_v19  }
  0x2f   : > { %1181 = vmatmul.mubr.msk.f32.gmra.mxu0 %vm320_vm0, %v257_v20 }
  0x30   : > { %1183 = vmatprep.mubr.msk.f32.mxu0 %vm320_vm0, %v258_v21  ;;  %499 = vperm.xlu0 %1265, %v481_v22   ;;  %v605_v22 = vld [vmem:[%s1526_s2 + $0x78] sm:$0xff] }
  0x31   : > { %494 = vperm.xlu1 %1266, %v480_v23   ;;  %v1296_v23 = vmov 0.0  }
  0x33   : > { %1184 = vmatmul.mubr.msk.f32.gmra.mxu0 %vm320_vm0, %v259_v24 }
  0x34   : > { %489 = vperm.xlu0 %1265, %v479_v25   ;;  %1216 = vmatprep.mubr.msk.f32.mxu0 %vm618_vm2, %v604_v5 }
  0x35   : > { %484 = vperm.xlu1 %1266, %v478_v26  }
  0x38   : > { %615 = vperm.xlu0 %1265, %v607_v27  }
  0x39   : > { %610 = vperm.xlu1 %1266, %v606_v28  }
  0x3c   : > { %706 = vperm.xlu0 %1265, %v703_v29  }
  0x3d   : > { %317 = vperm.xlu1 %1266, %v269_v30  }
  0x40   : > { %312 = vperm.xlu0 %1265, %v268_v31  }
  0x41   : > { %891 = vperm.xlu1 %1266, %v888_v32  }
  0x9b   : > { %v308_v36 = vpop.permute.xlu0 %307 }
  0x9c   : > { %v298_v38 = vpop.permute.xlu1 %297 }
  0x9f   : > { %v303_v41 = vpop.permute.xlu0 %302 }
  0xa0   : > { %v293_v43 = vpop.permute.xlu1 %292 }
  0xa3   : > { %v288_v50 = vpop.permute.xlu0 %287 }
  0xa4   : > { %v283_v53 = vpop.permute.xlu1 %282 }
  0xa7   : > { %v278_v58 = vpop.permute.xlu0 %277 }
  0xa8   : > { %v273_v61 = vpop.permute.xlu1 %272 }
  0xab   : > { %v500_v6 = vpop.permute.xlu0 %499 }
  0xac   : > { %v495_v8 = vpop.permute.xlu1 %494 }
  0xaf   : > { %v490_v12 = vpop.permute.xlu0 %489 }
  0xb0   : > { %v485_v17 = vpop.permute.xlu1 %484 }
  0xb3   : > { %v616_v26 = vpop.permute.xlu0 %615 }
  0xb4   : > { %v611_v29 = vpop.permute.xlu1 %610 }
  0xe3   : > { %v1173_v34 = vpop.f32.mrf.mxu0 }
  0xe4   : > { %v423_v59 = vadd.f32 %v1173_v34, %v278_v58  ;;  %v702_v34 = vld [vmem:[%s1526_s2 + $0x80] sm:$0x3f] }
  0xe5   : > { %v417_v35 = vpop.f32.mrf.mxu0 }
  0xe6   : > { %v418_v62 = vadd.f32 %v417_v35, %v273_v61  ;;  %v467_v0 = vmax.f32 %v423_v59, 0.0  ;;  %v794_v35 = vld [vmem:[%s1526_s2 + $0x88] sm:$0xff]  ;;  %v887_v61 = vld [vmem:[%s1526_s2 + $0x98] sm:$0xf] }
  0xe7   : > { %v1176_v37 = vpop.f32.mrf.mxu0 }
  0xe8   : > { %v433_v54 = vadd.f32 %v1176_v37, %v288_v50  ;;  %v466_v1 = vmax.f32 %v418_v62, 0.0  ;;  %v795_v50 = vld [vmem:[%s1526_s2 + $0x90] sm:$0xff] }
  0xe9   : > { %v427_v39 = vpop.f32.mrf.mxu0 }
  0xea   : > { %v428_v56 = vadd.f32 %v427_v39, %v283_v53  ;;  %v469_v60 = vmax.f32 %v433_v54, 0.0 }
  0xeb   : > { %v1179_v40 = vpop.f32.mrf.mxu0 }
  0xec   : > { %v443_v47 = vadd.f32 %v1179_v40, %v298_v38  ;;  %v468_v63 = vmax.f32 %v428_v56, 0.0 }
  0xed   : > { %v437_v42 = vpop.f32.mrf.mxu0 }
  0xee   : > { %v438_v51 = vadd.f32 %v437_v42, %v293_v43  ;;  %v471_v55 = vmax.f32 %v443_v47, 0.0  ;;  %v785_v42 = vld [vmem:[%s247_s29] sm:$0x7] }
  0xef   : > { %v1182_v44 = vpop.f32.mrf.mxu0  ;;  %v787_v43 = vrot.slane %v785_v42, 5 }
  0xf0   : > { %v453_v45 = vadd.f32 %v1182_v44, %v308_v36  ;;  %v470_v57 = vmax.f32 %v438_v51, 0.0  ;;  %v707_v36 = vpop.permute.xlu0 %706  ;;  %v318_v51 = vpop.permute.xlu1 %317 }
  0xf1   : > { %v447_v46 = vpop.f32.mrf.mxu0 }
  0xf2   : > { %v473_v48 = vmax.f32 %v453_v45, 0.0  ;;  %v448_v49 = vadd.f32 %v447_v46, %v303_v41 }
  0xf3   : > { %v1185_v24 = vpop.f32.mrf.mxu0 }
  0xf4   : > { %v472_v52 = vmax.f32 %v448_v49, 0.0  ;;  %1186 = vmatprep.subr.mxu1 %v473_v48  ;;  %v313_v53 = vpop.permute.xlu0 %312  ;;  %v892_v62 = vpop.permute.xlu1 %891 }
  0xf5   : > { %1187 = vmatpush3.msra.mxu1 %v473_v48  ;;  %v457_v25 = vpop.f32.mrf.mxu0 }
  0xf6   : > { %1188 = vmatprep.subr.mxu1 %v472_v52 }
  0xf7   : > { %1189 = vmatpush3.msra.mxu1 %v472_v52  ;;  %v463_v52 = vadd.f32 %v1185_v24, %v318_v51 }
  0xf8   : > { %1190 = vmatprep.subr.mxu1 %v471_v55 }
  0xf9   : > { %1191 = vmatpush3.msra.mxu1 %v471_v55  ;;  %v458_v55 = vadd.f32 %v457_v25, %v313_v53 }
  0xfa   : > { %1192 = vmatprep.subr.mxu1 %v470_v57 }
  0xfb   : > { %1193 = vmatpush3.msra.mxu1 %v470_v57 }
  0xfc   : > { %1194 = vmatprep.subr.mxu1 %v469_v60 }
  0xfd   : > { %1195 = vmatpush3.msra.mxu1 %v469_v60 }
  0xfe   : > { %1196 = vmatprep.subr.mxu1 %v468_v63 }
  0xff   : > { %1197 = vmatpush3.msra.mxu1 %v468_v63 }
 0x100   : > { %1198 = vmatprep.subr.mxu1 %v467_v0 }
 0x101   : > { %1199 = vmatpush3.msra.mxu1 %v467_v0 }
 0x102   : > { %1200 = vmatprep.subr.mxu1 %v466_v1 }
 0x103   : > { %1201 = vmatpush3.msra.mxu1 %v466_v1 }
 0x104   : > { %1203 = vmatmul.mubr.msk.f32.vlgmr.msra.gmra.mxu1 %vm502_vm1, %v475_v2  ;;  %1219 = vmatprep.subr.mxu1 %v1296_v23 }
 0x105   : > { %1205 = vmatprep.mubr.msk.f32.mxu1 %vm502_vm1, %v476_v3 }
 0x108   : > { %1206 = vmatmul.mubr.msk.f32.gmra.mxu1 %vm502_vm1, %v477_v4 }
 0x109   : > { %1223 = vmatprep.mubr.msk.f32.mxu1 %vm1297_vm3, %v1296_v23 }
 0x1c4   : > { %v1204_v7 = vpop.f32.mrf.mxu1 }
 0x1c5   : > { %v587_v14 = vadd.f32 %v1204_v7, %v490_v12 }
 0x1c6   : > { %v581_v9 = vpop.f32.mrf.mxu1 }
 0x1c7   : > { %v582_v18 = vadd.f32 %v581_v9, %v485_v17  ;;  %v601_v20 = vmax.f32 %v587_v14, 0.0 }
 0x1c8   : > { %v1207_v10 = vpop.f32.mrf.mxu1 }
 0x1c9   : > { %v597_v11 = vadd.f32 %v1207_v10, %v500_v6  ;;  %v600_v21 = vmax.f32 %v582_v18, 0.0 }
 0x1ca   : > { %v591_v13 = vpop.f32.mrf.mxu1 }
 0x1cb   : > { %v603_v15 = vmax.f32 %v597_v11, 0.0  ;;  %v592_v16 = vadd.f32 %v591_v13, %v495_v8 }
 0x1cd   : > { %v602_v19 = vmax.f32 %v592_v16, 0.0  ;;  %1208 = vmatprep.subr.mxu0 %v603_v15 }
 0x1ce   : > { %1209 = vmatpush3.msra.mxu0 %v603_v15 }
 0x1cf   : > { %1210 = vmatprep.subr.mxu0 %v602_v19 }
 0x1d0   : > { %1211 = vmatpush3.msra.mxu0 %v602_v19 }
 0x1d1   : > { %1212 = vmatprep.subr.mxu0 %v601_v20 }
 0x1d2   : > { %1213 = vmatpush3.msra.mxu0 %v601_v20 }
 0x1d3   : > { %1214 = vmatprep.subr.mxu0 %v600_v21 }
 0x1d4   : > { %1215 = vmatpush3.msra.mxu0 %v600_v21 }
 0x1d5   : > { %1217 = vmatmul.mubr.msk.f32.vlgmr.msra.gmra.mxu0 %vm618_vm2, %v605_v22 }
 0x1d6   : > { %1228 = vmatprep.mubr.msk.f32.mxu0 %vm798_vm4, %v794_v35 }
 0x295   : > { %v1218_v27 = vpop.f32.mrf.mxu0 }
 0x296   : > { %v697_v28 = vadd.f32 %v1218_v27, %v616_v26 }
 0x297   : > { %v691_v30 = vpop.f32.mrf.mxu0 }
 0x298   : > { %v701_v31 = vmax.f32 %v697_v28, 0.0  ;;  %v692_v32 = vadd.f32 %v691_v30, %v611_v29 }
 0x29a   : > { %v700_v33 = vmax.f32 %v692_v32, 0.0  ;;  %1220 = vmatpush3.msra.mxu1 %v701_v31 }
 0x29b   : > { %1221 = vmatprep.subr.mxu1 %v1296_v23 }
 0x29c   : > { %1222 = vmatpush3.msra.mxu1 %v700_v33 }
 0x29d   : > { %1224 = vmatmul.mubr.msk.f32.vlgmr.msra.gmra.mxu1 %vm320_vm0, %v702_v34  ;;  %1231 = vmatprep.subr.mxu1 %v1296_v23 }
 0x29e   : > { %1235 = vmatprep.mubr.msk.f32.mxu1 %vm1297_vm3, %v1296_v23 }
 0x35d   : > { %v778_v37 = vpop.f32.mrf.mxu1 }
 0x35e   : > { %v779_v38 = vadd.f32 %v778_v37, %v707_v36 }
 0x35f   : > { %v1225_v39 = vpop.f32.mrf.mxu1 }
 0x360   : > { %v782_v40 = vmul.f32 0.5, %v779_v38  ;;  %v791_v46 = vrot.slane %v779_v38, 5  ;;  %v968_v2 = vrot.slane %v779_v38, 4 }
 0x362   : > { %v783_v41 = vmul.f32 1.442695, %v782_v40 }
 0x364   : > { %1267 = vpow2.f32 %v783_v41 }
 0x371   : > { %v1268_v44 = vpop.eup %1267 }
 0x372   : > { %v789_v45 = vmul.f32 %v1268_v44, %v787_v43  ;;  %v971_v47 = vrot.slane %v1268_v44, 4 }
 0x374   : > { %v793_v48 = vadd.f32 %v791_v46, %v789_v45  ;;  %978 = vst [vmem:[%s1494_s30 + $0x8] sm:$0x3] %v971_v47 }
 0x376   : > { %v797_v49 = vrot.slane %v793_v48, 3 }
 0x378   : > { %1226 = vmatprep.subr.msk.mxu0 %vm805_vm5, %v797_v49 }
 0x379   : > { %1227 = vmatpush3.msk.msra.mxu0 %vm805_vm5, %v797_v49 }
 0x37a   : > { %1229 = vmatmul.mubr.msk.f32.vlgmr.msra.gmra.mxu0 %vm798_vm4, %v795_v50 }
 0x37b   : > { %v1020_v7 = vld [vmem:[%s1494_s30 + $0x8] sm:$0xff] (%p1348_p5) }
 0x37c   : > { %1021 = vst [vmem:[%s987_s12 + $0x10] sm:$0xff] (%p1348_p5), %v1020_v7 }
 0x43a   : > { %v1230_v54 = vpop.f32.mrf.mxu0 }
 0x43b   : > { %v884_v56 = vadd.f32 %v1230_v54, %v463_v52 }
 0x43c   : > { %v874_v57 = vpop.f32.mrf.mxu0 }
 0x43d   : > { %v886_v58 = vmax.f32 %v884_v56, 0.0  ;;  %v883_v59 = vadd.f32 %v874_v57, %v458_v55 }
 0x43f   : > { %v885_v60 = vmax.f32 %v883_v59, 0.0  ;;  %1232 = vmatpush3.msra.mxu1 %v886_v58 }
 0x440   : > { %1233 = vmatprep.subr.mxu1 %v1296_v23 }
 0x441   : > { %1234 = vmatpush3.msra.mxu1 %v885_v60 }
 0x442   : > { %1236 = vmatmul.mubr.msk.f32.vlgmr.msra.gmra.mxu1 %vm320_vm0, %v887_v61 }
 0x502   : > { %v963_v63 = vpop.f32.mrf.mxu1 }
 0x503   : > { %v964_v0 = vadd.f32 %v963_v63, %v892_v62 }
 0x504   : > { %v1237_v1 = vpop.f32.mrf.mxu1 }
 0x505   : > { %1269 = vtanh.f32 %v964_v0 }
 0x511   : > { %985 = sbr.rel (!%p1348_p5) target bundleno = 1310 (0x51e), region = 78 }
 0x512   : > { %v1270_v3 = vpop.eup %1269 }
 0x513   : > { %v974_v4 = vsel %vm973_vm6, %v1270_v3, %v968_v2 }
 0x514   : > { %v976_v5 = vsel %vm975_vm7, %v974_v4, %v971_v47 }
 0x515   : > { %977 = vst [vmem:[%s1494_s30] sm:$0xff] %v976_v5 }
 0x51c   : > { %v1018_v6 = vld [vmem:[%s1494_s30] sm:$0xff] }
 0x51d   : > { %1019 = vst [vmem:[%s987_s12] sm:$0xff] %v1018_v6 }
 0x51e PF: > { %p11_p11 = scmp.ge.s32.totalorder %s1338_s19, 4   ;;  %s1530_s15 = smov %s1289_s16 }
 0x51f   : > { %s1531_s16 = smov %s1346_s22  ;;  %s1532_s17 = smov %s1338_s19 }
 0x520   :  { %13 = sbr.rel (!%p11_p11) target bundleno = 2 (0x2), region = 150 }

</bundles_post_ra>
